<compile_context>
chip_gen: v5e
topology: v5e:2x2
jax: 0.10.0
libtpu: 0.0.40
codegen_flags: <defaults>
</compile_context>

<pallas_src>
import jax
import jax.numpy as jnp
from jax import lax
from jax.experimental import pallas as pl
from jax.experimental.pallas import tpu as pltpu


def lstm_kernel(xp_ref, wih_ref, whh_ref, b_ref, h_out_ref):
    """One grid step processes a tile of `tm` sequences end-to-end.

    xp_ref : (T, tm, H) bf16  tanh(Linear(4->H)(x)), time-major (proj hoisted to XLA)
    wih_ref: (H, 4H)    bf16  input->gate weights, pre-transposed, i/f/o cols * 0.5
    whh_ref: (H, 4H)    bf16  hidden->gate weights, pre-transposed, i/f/o cols * 0.5
    b_ref  : (1, 4H)    f32   (b_ih + b_hh), i/f/o sections * 0.5
    h_out  : (tm, H)    f32   final hidden state (pred head applied in wrapper)
    """
    T, tm, H = xp_ref.shape

    wih = wih_ref[...]          # (H, 4H) bf16, resident in vregs across the recurrence
    whh = whh_ref[...]          # (H, 4H) bf16
    b = b_ref[...]              # (1, 4H) f32

    # ---- LSTM recurrence (PyTorch gate order i, f, g, o) --------------------
    def step(t, carry):
        h, c = carry            # h: (tm, H) bf16, c: (tm, H) f32
        x_t = xp_ref[t]         # (tm, H) bf16
        # Both matmuls are bf16 MXU ops with f32 accumulation; the x_t matmul
        # has no cross-step dependence, so the scheduler can hide it under the
        # EUP/VPU work of neighbouring (unrolled) steps.
        g = (jnp.dot(x_t, wih, preferred_element_type=jnp.float32)
             + jnp.dot(h, whh, preferred_element_type=jnp.float32)
             + b)               # (tm, 4H) f32; i/f/o quarters hold x/2 (pre-scaled)
        a = jnp.tanh(g)         # ONE full-width EUP pass over all four gates
        s = 0.5 * a + 0.5       # sigmoid(x) = 0.5*(1 + tanh(x/2)); full-width VPU
        i = s[:, 0:H]
        f = s[:, H:2 * H]
        gg = a[:, 2 * H:3 * H]  # g-gate column was NOT pre-scaled -> plain tanh
        o = s[:, 3 * H:4 * H]
        c_new = f * c + i * gg
        h_new = (o * jnp.tanh(c_new)).astype(jnp.bfloat16)
        return (h_new, c_new)

    h0 = jnp.zeros((tm, H), jnp.bfloat16)
    c0 = jnp.zeros((tm, H), jnp.float32)
    # T is small and static: full unroll gives the scheduler cross-step visibility.
    h, _ = lax.fori_loop(0, T, step, (h0, c0), unroll=True)

    # Lane-dense-ish output (tm, H); tiny writeback, Linear(H->1) head in wrapper.
    h_out_ref[...] = h.astype(jnp.float32)


def _round_up(x, m):
    return ((x + m - 1) // m) * m


def _num_tensorcores():
    """Best-effort TC-per-chip detection (v7x has 2); fall back to 1."""
    try:
        n = int(getattr(jax.devices()[0], "num_cores", 1))
        return min(2, max(1, n))
    except Exception:
        return 1


def lstm_forward(x, mask, params, *, tm=512, num_cores=None):
    """Replicates LSTM.forward(x, mask): x is (B, N, T, 4) -> returns (B, N-1)."""
    del mask  # unused by the PyTorch module as well (kept for compatibility)
    B, N, T, F = x.shape
    H = params["w_hh"].shape[1]
    if num_cores is None:
        num_cores = _num_tensorcores()

    x = x[:, :-1, :, :].astype(jnp.float32)               # (B, N-1, T, F)
    M = B * (N - 1)

    # Transpose to time-major BEFORE the projection (F=4 << H=32: 8x less data
    # through the XLA layout shuffle), then hoisted Linear(4->H)+tanh, bf16 out.
    xt = jnp.transpose(x.reshape(M, T, F), (1, 0, 2))     # (T, M, F)
    xp = jnp.tanh(xt @ params["w_lin"].T.astype(jnp.float32)
                  + params["b_lin"].astype(jnp.float32)).astype(jnp.bfloat16)  # (T, M, H)

    # ---- tile / grid selection ----------------------------------------------
    tm = max(8, min(_round_up(tm, 8), _round_up(M, 8)))
    n_tiles = -(-M // tm)
    # Balance the 'parallel' grid axis across TensorCores (v7x: 2 TCs).
    if num_cores > 1 and n_tiles > 1:
        n_tiles = _round_up(n_tiles, num_cores)
    M_pad = n_tiles * tm
    if M_pad != M:
        xp = jnp.pad(xp, ((0, 0), (0, M_pad - M), (0, 0)))

    # ---- weight prep: transpose, i/f/o pre-scale (sigmoid-via-tanh), bf16 ----
    # PyTorch LSTM gate order in the 4H axis is [i, f, g, o].
    gate_scale = jnp.concatenate([
        jnp.full((H,), 0.5, jnp.float32),   # i
        jnp.full((H,), 0.5, jnp.float32),   # f
        jnp.ones((H,), jnp.float32),        # g (true tanh gate, unscaled)
        jnp.full((H,), 0.5, jnp.float32),   # o
    ])
    wih = (params["w_ih"].T.astype(jnp.float32) * gate_scale[None, :]).astype(jnp.bfloat16)
    whh = (params["w_hh"].T.astype(jnp.float32) * gate_scale[None, :]).astype(jnp.bfloat16)
    b = ((params["b_ih"] + params["b_hh"]).astype(jnp.float32) * gate_scale)[None, :]

    # VMEM (tm=512, T=8, H=32): xp block 256 KiB x2 buffers + weights ~16 KiB +
    # out 64 KiB x2  ->  well under the scoped default on every generation.
    h_last = pl.pallas_call(
        lstm_kernel,
        out_shape=jax.ShapeDtypeStruct((M_pad, H), jnp.float32),
        grid_spec=pltpu.PrefetchScalarGridSpec(
            num_scalar_prefetch=0,
            grid=(n_tiles,),
            in_specs=[
                pl.BlockSpec((T, tm, H), lambda i: (0, i, 0)),
                pl.BlockSpec((H, 4 * H), lambda i: (0, 0)),
                pl.BlockSpec((H, 4 * H), lambda i: (0, 0)),
                pl.BlockSpec((1, 4 * H), lambda i: (0, 0)),
            ],
            out_specs=pl.BlockSpec((tm, H), lambda i: (i, 0)),
        ),
        compiler_params=pltpu.CompilerParams(
            dimension_semantics=("parallel",)),
    )(xp, wih, whh, b)

    # Prediction head Linear(H -> 1) on the final hidden state, in XLA (trivial).
    pred = (h_last[:M] @ params["w_pred"].T.astype(jnp.float32)
            + params["b_pred"].astype(jnp.float32))        # (M, 1)
    return pred.reshape(B, N - 1)


def lstm_ref(x, params):
    """Pure-JAX f32 reference mirroring the PyTorch forward (for verification)."""
    B, N, T, F = x.shape
    H = params["w_hh"].shape[1]
    xs = x[:, :-1].reshape(-1, T, F).astype(jnp.float32)
    out = jnp.tanh(xs @ params["w_lin"].T + params["b_lin"])
    M = out.shape[0]
    h = jnp.zeros((M, H), jnp.float32)
    c = jnp.zeros((M, H), jnp.float32)
    for t in range(T):
        g = (out[:, t] @ params["w_ih"].T + params["b_ih"]
             + h @ params["w_hh"].T + params["b_hh"])
        i = jax.nn.sigmoid(g[:, :H])
        f = jax.nn.sigmoid(g[:, H:2 * H])
        gg = jnp.tanh(g[:, 2 * H:3 * H])
        o = jax.nn.sigmoid(g[:, 3 * H:])
        c = f * c + i * gg
        h = o * jnp.tanh(c)
    pred = h @ params["w_pred"].T + params["b_pred"]
    return pred.reshape(B, N - 1)


if __name__ == "__main__":
    T, F, H = 8, 4, 32

    key = jax.random.PRNGKey(0)
    keys = jax.random.split(key, 12)

    def uinit(k, shape, fan_in):
        bound = 1.0 / (fan_in ** 0.5)
        return jax.random.uniform(k, shape, jnp.float32, -bound, bound)

    # Shapes follow nn.Linear(4, H), nn.LSTM(H, H, 1), nn.Linear(H, 1).
    params = {
        "w_lin": uinit(keys[0], (H, F), F),
        "b_lin": uinit(keys[1], (H,), F),
        "w_ih": uinit(keys[2], (4 * H, H), H),   # gate order [i, f, g, o]
        "w_hh": uinit(keys[3], (4 * H, H), H),
        "b_ih": uinit(keys[4], (4 * H,), H),
        "b_hh": uinit(keys[5], (4 * H,), H),
        "w_pred": uinit(keys[6], (1, H), H),
        "b_pred": uinit(keys[7], (1,), H),
    }

    # --- Test 1: small shape from the spec (M=8 -> single tile, grid=1) ------
    B, N = 2, 5
    x = jax.random.normal(keys[8], (B, N, T, F), jnp.float32)
    mask = jnp.ones((B, N), jnp.float32)  # unused, kept for signature parity

    out = jax.block_until_ready(lstm_forward(x, mask, params))
    ref = lstm_ref(x, params)
    assert out.shape == (B, N - 1), out.shape
    # Tolerance accounts for bf16 MXU operands and bf16-carried h
    # (f32 accumulation / f32 cell state); observed error is O(1e-3).
    if not bool(jnp.allclose(out, ref, atol=3e-2, rtol=3e-2)):
        raise AssertionError("Pallas kernel does not match reference (small test)")

    # --- Test 2: exercises tiling, padding and a multi-step parallel grid ----
    B2, N2 = 4, 51                      # M = 200, not a multiple of tm=64
    x2 = jax.random.normal(keys[9], (B2, N2, T, F), jnp.float32)
    mask2 = jnp.ones((B2, N2), jnp.float32)

    out2 = jax.block_until_ready(lstm_forward(x2, mask2, params, tm=64))
    ref2 = lstm_ref(x2, params)
    assert out2.shape == (B2, N2 - 1), out2.shape
    if not bool(jnp.allclose(out2, ref2, atol=3e-2, rtol=3e-2)):
        raise AssertionError("Pallas kernel does not match reference (tiled test)")

    print("KERNEL_OK")
</pallas_src>

<mosaic_0001>
module attributes {stable_mosaic.version = 11 : i64} {
  func.func @lstm_kernel(%arg0: i32, %arg1: memref<8x8x32xbf16, #tpu.memory_space<vmem>>, %arg2: memref<32x128xbf16, #tpu.memory_space<vmem>>, %arg3: memref<32x128xbf16, #tpu.memory_space<vmem>>, %arg4: memref<1x128xf32, #tpu.memory_space<vmem>>, %arg5: memref<8x32xf32, #tpu.memory_space<vmem>>) attributes {dimension_semantics = [#tpu.dimension_semantics<parallel>], iteration_bounds = array<i64: 1>, scalar_prefetch = 0 : i64, scratch_operands = 0 : i64, tpu.core_type = #tpu.core_type<tc>, window_params = [{transform_indices = @transform_0, window_bounds = array<i64: 8, 8, 32>}, {pipeline_mode = #tpu.pipeline_mode<synchronous>, transform_indices = @transform_1, window_bounds = array<i64: 32, 128>}, {pipeline_mode = #tpu.pipeline_mode<synchronous>, transform_indices = @transform_2, window_bounds = array<i64: 32, 128>}, {pipeline_mode = #tpu.pipeline_mode<synchronous>, transform_indices = @transform_3, window_bounds = array<i64: 1, 128>}, {transform_indices = @transform_4, window_bounds = array<i64: 8, 32>}]} {
    %c0 = arith.constant 0 : index
    %c0_0 = arith.constant 0 : index
    %0 = vector.load %arg2[%c0, %c0_0] : memref<32x128xbf16, #tpu.memory_space<vmem>>, vector<32x128xbf16>
    %c0_1 = arith.constant 0 : index
    %c0_2 = arith.constant 0 : index
    %1 = vector.load %arg3[%c0_1, %c0_2] : memref<32x128xbf16, #tpu.memory_space<vmem>>, vector<32x128xbf16>
    %c0_3 = arith.constant 0 : index
    %c0_4 = arith.constant 0 : index
    %2 = vector.load %arg4[%c0_3, %c0_4] : memref<1x128xf32, #tpu.memory_space<vmem>>, vector<1x128xf32>
    %cst = arith.constant 0.000000e+00 : bf16
    %3 = vector.broadcast %cst : bf16 to vector<8x32xbf16>
    %cst_5 = arith.constant 0.000000e+00 : f32
    %4 = vector.broadcast %cst_5 : f32 to vector<8x32xf32>
    %c0_i32 = arith.constant 0 : i32
    %5 = arith.index_cast %c0_i32 : i32 to index
    %c0_6 = arith.constant 0 : index
    %c0_7 = arith.constant 0 : index
    %6 = vector.load %arg1[%5, %c0_6, %c0_7] : memref<8x8x32xbf16, #tpu.memory_space<vmem>>, vector<1x8x32xbf16>
    %7 = vector.shape_cast %6 : vector<1x8x32xbf16> to vector<8x32xbf16>
    %cst_8 = arith.constant dense<0.000000e+00> : vector<8x128xf32>
    %8 = tpu.matmul %7, %0, %cst_8 {dimension_numbers = #tpu.dot_dimension_numbers<[1], [0], [0], [1], [0, 0, 1, 1], [], []>} : vector<8x32xbf16>, vector<32x128xbf16>, vector<8x128xf32> -> vector<8x128xf32>
    %cst_9 = arith.constant dense<0.000000e+00> : vector<8x128xf32>
    %9 = tpu.matmul %3, %1, %cst_9 {dimension_numbers = #tpu.dot_dimension_numbers<[1], [0], [0], [1], [0, 0, 1, 1], [], []>} : vector<8x32xbf16>, vector<32x128xbf16>, vector<8x128xf32> -> vector<8x128xf32>
    %10 = arith.addf %8, %9 : vector<8x128xf32>
    %11 = vector.broadcast %2 : vector<1x128xf32> to vector<8x128xf32>
    %12 = arith.addf %10, %11 : vector<8x128xf32>
    %13 = math.tanh %12 : vector<8x128xf32>
    %cst_10 = arith.constant 5.000000e-01 : f32
    %14 = vector.broadcast %cst_10 : f32 to vector<8x128xf32>
    %15 = arith.mulf %14, %13 : vector<8x128xf32>
    %cst_11 = arith.constant 5.000000e-01 : f32
    %16 = vector.broadcast %cst_11 : f32 to vector<8x128xf32>
    %17 = arith.addf %15, %16 : vector<8x128xf32>
    %18 = vector.extract_strided_slice %17 {offsets = [0, 0], sizes = [8, 32], strides = [1, 1]} : vector<8x128xf32> to vector<8x32xf32>
    %19 = vector.extract_strided_slice %17 {offsets = [0, 32], sizes = [8, 32], strides = [1, 1]} : vector<8x128xf32> to vector<8x32xf32>
    %20 = vector.extract_strided_slice %13 {offsets = [0, 64], sizes = [8, 32], strides = [1, 1]} : vector<8x128xf32> to vector<8x32xf32>
    %21 = vector.extract_strided_slice %17 {offsets = [0, 96], sizes = [8, 32], strides = [1, 1]} : vector<8x128xf32> to vector<8x32xf32>
    %22 = arith.mulf %19, %4 : vector<8x32xf32>
    %23 = arith.mulf %18, %20 : vector<8x32xf32>
    %24 = arith.addf %22, %23 : vector<8x32xf32>
    %25 = math.tanh %24 : vector<8x32xf32>
    %26 = arith.mulf %21, %25 : vector<8x32xf32>
    %27 = arith.truncf %26 : vector<8x32xf32> to vector<8x32xbf16>
    %c1_i32 = arith.constant 1 : i32
    %28 = arith.index_cast %c1_i32 : i32 to index
    %c0_12 = arith.constant 0 : index
    %c0_13 = arith.constant 0 : index
    %29 = vector.load %arg1[%28, %c0_12, %c0_13] : memref<8x8x32xbf16, #tpu.memory_space<vmem>>, vector<1x8x32xbf16>
    %30 = vector.shape_cast %29 : vector<1x8x32xbf16> to vector<8x32xbf16>
    %cst_14 = arith.constant dense<0.000000e+00> : vector<8x128xf32>
    %31 = tpu.matmul %30, %0, %cst_14 {dimension_numbers = #tpu.dot_dimension_numbers<[1], [0], [0], [1], [0, 0, 1, 1], [], []>} : vector<8x32xbf16>, vector<32x128xbf16>, vector<8x128xf32> -> vector<8x128xf32>
    %cst_15 = arith.constant dense<0.000000e+00> : vector<8x128xf32>
    %32 = tpu.matmul %27, %1, %cst_15 {dimension_numbers = #tpu.dot_dimension_numbers<[1], [0], [0], [1], [0, 0, 1, 1], [], []>} : vector<8x32xbf16>, vector<32x128xbf16>, vector<8x128xf32> -> vector<8x128xf32>
    %33 = arith.addf %31, %32 : vector<8x128xf32>
    %34 = vector.broadcast %2 : vector<1x128xf32> to vector<8x128xf32>
    %35 = arith.addf %33, %34 : vector<8x128xf32>
    %36 = math.tanh %35 : vector<8x128xf32>
    %cst_16 = arith.constant 5.000000e-01 : f32
    %37 = vector.broadcast %cst_16 : f32 to vector<8x128xf32>
    %38 = arith.mulf %37, %36 : vector<8x128xf32>
    %cst_17 = arith.constant 5.000000e-01 : f32
    %39 = vector.broadcast %cst_17 : f32 to vector<8x128xf32>
    %40 = arith.addf %38, %39 : vector<8x128xf32>
    %41 = vector.extract_strided_slice %40 {offsets = [0, 0], sizes = [8, 32], strides = [1, 1]} : vector<8x128xf32> to vector<8x32xf32>
    %42 = vector.extract_strided_slice %40 {offsets = [0, 32], sizes = [8, 32], strides = [1, 1]} : vector<8x128xf32> to vector<8x32xf32>
    %43 = vector.extract_strided_slice %36 {offsets = [0, 64], sizes = [8, 32], strides = [1, 1]} : vector<8x128xf32> to vector<8x32xf32>
    %44 = vector.extract_strided_slice %40 {offsets = [0, 96], sizes = [8, 32], strides = [1, 1]} : vector<8x128xf32> to vector<8x32xf32>
    %45 = arith.mulf %42, %24 : vector<8x32xf32>
    %46 = arith.mulf %41, %43 : vector<8x32xf32>
    %47 = arith.addf %45, %46 : vector<8x32xf32>
    %48 = math.tanh %47 : vector<8x32xf32>
    %49 = arith.mulf %44, %48 : vector<8x32xf32>
    %50 = arith.truncf %49 : vector<8x32xf32> to vector<8x32xbf16>
    %c2_i32 = arith.constant 2 : i32
    %51 = arith.index_cast %c2_i32 : i32 to index
    %c0_18 = arith.constant 0 : index
    %c0_19 = arith.constant 0 : index
    %52 = vector.load %arg1[%51, %c0_18, %c0_19] : memref<8x8x32xbf16, #tpu.memory_space<vmem>>, vector<1x8x32xbf16>
    %53 = vector.shape_cast %52 : vector<1x8x32xbf16> to vector<8x32xbf16>
    %cst_20 = arith.constant dense<0.000000e+00> : vector<8x128xf32>
    %54 = tpu.matmul %53, %0, %cst_20 {dimension_numbers = #tpu.dot_dimension_numbers<[1], [0], [0], [1], [0, 0, 1, 1], [], []>} : vector<8x32xbf16>, vector<32x128xbf16>, vector<8x128xf32> -> vector<8x128xf32>
    %cst_21 = arith.constant dense<0.000000e+00> : vector<8x128xf32>
    %55 = tpu.matmul %50, %1, %cst_21 {dimension_numbers = #tpu.dot_dimension_numbers<[1], [0], [0], [1], [0, 0, 1, 1], [], []>} : vector<8x32xbf16>, vector<32x128xbf16>, vector<8x128xf32> -> vector<8x128xf32>
    %56 = arith.addf %54, %55 : vector<8x128xf32>
    %57 = vector.broadcast %2 : vector<1x128xf32> to vector<8x128xf32>
    %58 = arith.addf %56, %57 : vector<8x128xf32>
    %59 = math.tanh %58 : vector<8x128xf32>
    %cst_22 = arith.constant 5.000000e-01 : f32
    %60 = vector.broadcast %cst_22 : f32 to vector<8x128xf32>
    %61 = arith.mulf %60, %59 : vector<8x128xf32>
    %cst_23 = arith.constant 5.000000e-01 : f32
    %62 = vector.broadcast %cst_23 : f32 to vector<8x128xf32>
    %63 = arith.addf %61, %62 : vector<8x128xf32>
    %64 = vector.extract_strided_slice %63 {offsets = [0, 0], sizes = [8, 32], strides = [1, 1]} : vector<8x128xf32> to vector<8x32xf32>
    %65 = vector.extract_strided_slice %63 {offsets = [0, 32], sizes = [8, 32], strides = [1, 1]} : vector<8x128xf32> to vector<8x32xf32>
    %66 = vector.extract_strided_slice %59 {offsets = [0, 64], sizes = [8, 32], strides = [1, 1]} : vector<8x128xf32> to vector<8x32xf32>
    %67 = vector.extract_strided_slice %63 {offsets = [0, 96], sizes = [8, 32], strides = [1, 1]} : vector<8x128xf32> to vector<8x32xf32>
    %68 = arith.mulf %65, %47 : vector<8x32xf32>
    %69 = arith.mulf %64, %66 : vector<8x32xf32>
    %70 = arith.addf %68, %69 : vector<8x32xf32>
    %71 = math.tanh %70 : vector<8x32xf32>
    %72 = arith.mulf %67, %71 : vector<8x32xf32>
    %73 = arith.truncf %72 : vector<8x32xf32> to vector<8x32xbf16>
    %c3_i32 = arith.constant 3 : i32
    %74 = arith.index_cast %c3_i32 : i32 to index
    %c0_24 = arith.constant 0 : index
    %c0_25 = arith.constant 0 : index
    %75 = vector.load %arg1[%74, %c0_24, %c0_25] : memref<8x8x32xbf16, #tpu.memory_space<vmem>>, vector<1x8x32xbf16>
    %76 = vector.shape_cast %75 : vector<1x8x32xbf16> to vector<8x32xbf16>
    %cst_26 = arith.constant dense<0.000000e+00> : vector<8x128xf32>
    %77 = tpu.matmul %76, %0, %cst_26 {dimension_numbers = #tpu.dot_dimension_numbers<[1], [0], [0], [1], [0, 0, 1, 1], [], []>} : vector<8x32xbf16>, vector<32x128xbf16>, vector<8x128xf32> -> vector<8x128xf32>
    %cst_27 = arith.constant dense<0.000000e+00> : vector<8x128xf32>
    %78 = tpu.matmul %73, %1, %cst_27 {dimension_numbers = #tpu.dot_dimension_numbers<[1], [0], [0], [1], [0, 0, 1, 1], [], []>} : vector<8x32xbf16>, vector<32x128xbf16>, vector<8x128xf32> -> vector<8x128xf32>
    %79 = arith.addf %77, %78 : vector<8x128xf32>
    %80 = vector.broadcast %2 : vector<1x128xf32> to vector<8x128xf32>
    %81 = arith.addf %79, %80 : vector<8x128xf32>
    %82 = math.tanh %81 : vector<8x128xf32>
    %cst_28 = arith.constant 5.000000e-01 : f32
    %83 = vector.broadcast %cst_28 : f32 to vector<8x128xf32>
    %84 = arith.mulf %83, %82 : vector<8x128xf32>
    %cst_29 = arith.constant 5.000000e-01 : f32
    %85 = vector.broadcast %cst_29 : f32 to vector<8x128xf32>
    %86 = arith.addf %84, %85 : vector<8x128xf32>
    %87 = vector.extract_strided_slice %86 {offsets = [0, 0], sizes = [8, 32], strides = [1, 1]} : vector<8x128xf32> to vector<8x32xf32>
    %88 = vector.extract_strided_slice %86 {offsets = [0, 32], sizes = [8, 32], strides = [1, 1]} : vector<8x128xf32> to vector<8x32xf32>
    %89 = vector.extract_strided_slice %82 {offsets = [0, 64], sizes = [8, 32], strides = [1, 1]} : vector<8x128xf32> to vector<8x32xf32>
    %90 = vector.extract_strided_slice %86 {offsets = [0, 96], sizes = [8, 32], strides = [1, 1]} : vector<8x128xf32> to vector<8x32xf32>
    %91 = arith.mulf %88, %70 : vector<8x32xf32>
    %92 = arith.mulf %87, %89 : vector<8x32xf32>
    %93 = arith.addf %91, %92 : vector<8x32xf32>
    %94 = math.tanh %93 : vector<8x32xf32>
    %95 = arith.mulf %90, %94 : vector<8x32xf32>
    %96 = arith.truncf %95 : vector<8x32xf32> to vector<8x32xbf16>
    %c4_i32 = arith.constant 4 : i32
    %97 = arith.index_cast %c4_i32 : i32 to index
    %c0_30 = arith.constant 0 : index
    %c0_31 = arith.constant 0 : index
    %98 = vector.load %arg1[%97, %c0_30, %c0_31] : memref<8x8x32xbf16, #tpu.memory_space<vmem>>, vector<1x8x32xbf16>
    %99 = vector.shape_cast %98 : vector<1x8x32xbf16> to vector<8x32xbf16>
    %cst_32 = arith.constant dense<0.000000e+00> : vector<8x128xf32>
    %100 = tpu.matmul %99, %0, %cst_32 {dimension_numbers = #tpu.dot_dimension_numbers<[1], [0], [0], [1], [0, 0, 1, 1], [], []>} : vector<8x32xbf16>, vector<32x128xbf16>, vector<8x128xf32> -> vector<8x128xf32>
    %cst_33 = arith.constant dense<0.000000e+00> : vector<8x128xf32>
    %101 = tpu.matmul %96, %1, %cst_33 {dimension_numbers = #tpu.dot_dimension_numbers<[1], [0], [0], [1], [0, 0, 1, 1], [], []>} : vector<8x32xbf16>, vector<32x128xbf16>, vector<8x128xf32> -> vector<8x128xf32>
    %102 = arith.addf %100, %101 : vector<8x128xf32>
    %103 = vector.broadcast %2 : vector<1x128xf32> to vector<8x128xf32>
    %104 = arith.addf %102, %103 : vector<8x128xf32>
    %105 = math.tanh %104 : vector<8x128xf32>
    %cst_34 = arith.constant 5.000000e-01 : f32
    %106 = vector.broadcast %cst_34 : f32 to vector<8x128xf32>
    %107 = arith.mulf %106, %105 : vector<8x128xf32>
    %cst_35 = arith.constant 5.000000e-01 : f32
    %108 = vector.broadcast %cst_35 : f32 to vector<8x128xf32>
    %109 = arith.addf %107, %108 : vector<8x128xf32>
    %110 = vector.extract_strided_slice %109 {offsets = [0, 0], sizes = [8, 32], strides = [1, 1]} : vector<8x128xf32> to vector<8x32xf32>
    %111 = vector.extract_strided_slice %109 {offsets = [0, 32], sizes = [8, 32], strides = [1, 1]} : vector<8x128xf32> to vector<8x32xf32>
    %112 = vector.extract_strided_slice %105 {offsets = [0, 64], sizes = [8, 32], strides = [1, 1]} : vector<8x128xf32> to vector<8x32xf32>
    %113 = vector.extract_strided_slice %109 {offsets = [0, 96], sizes = [8, 32], strides = [1, 1]} : vector<8x128xf32> to vector<8x32xf32>
    %114 = arith.mulf %111, %93 : vector<8x32xf32>
    %115 = arith.mulf %110, %112 : vector<8x32xf32>
    %116 = arith.addf %114, %115 : vector<8x32xf32>
    %117 = math.tanh %116 : vector<8x32xf32>
    %118 = arith.mulf %113, %117 : vector<8x32xf32>
    %119 = arith.truncf %118 : vector<8x32xf32> to vector<8x32xbf16>
    %c5_i32 = arith.constant 5 : i32
    %120 = arith.index_cast %c5_i32 : i32 to index
    %c0_36 = arith.constant 0 : index
    %c0_37 = arith.constant 0 : index
    %121 = vector.load %arg1[%120, %c0_36, %c0_37] : memref<8x8x32xbf16, #tpu.memory_space<vmem>>, vector<1x8x32xbf16>
    %122 = vector.shape_cast %121 : vector<1x8x32xbf16> to vector<8x32xbf16>
    %cst_38 = arith.constant dense<0.000000e+00> : vector<8x128xf32>
    %123 = tpu.matmul %122, %0, %cst_38 {dimension_numbers = #tpu.dot_dimension_numbers<[1], [0], [0], [1], [0, 0, 1, 1], [], []>} : vector<8x32xbf16>, vector<32x128xbf16>, vector<8x128xf32> -> vector<8x128xf32>
    %cst_39 = arith.constant dense<0.000000e+00> : vector<8x128xf32>
    %124 = tpu.matmul %119, %1, %cst_39 {dimension_numbers = #tpu.dot_dimension_numbers<[1], [0], [0], [1], [0, 0, 1, 1], [], []>} : vector<8x32xbf16>, vector<32x128xbf16>, vector<8x128xf32> -> vector<8x128xf32>
    %125 = arith.addf %123, %124 : vector<8x128xf32>
    %126 = vector.broadcast %2 : vector<1x128xf32> to vector<8x128xf32>
    %127 = arith.addf %125, %126 : vector<8x128xf32>
    %128 = math.tanh %127 : vector<8x128xf32>
    %cst_40 = arith.constant 5.000000e-01 : f32
    %129 = vector.broadcast %cst_40 : f32 to vector<8x128xf32>
    %130 = arith.mulf %129, %128 : vector<8x128xf32>
    %cst_41 = arith.constant 5.000000e-01 : f32
    %131 = vector.broadcast %cst_41 : f32 to vector<8x128xf32>
    %132 = arith.addf %130, %131 : vector<8x128xf32>
    %133 = vector.extract_strided_slice %132 {offsets = [0, 0], sizes = [8, 32], strides = [1, 1]} : vector<8x128xf32> to vector<8x32xf32>
    %134 = vector.extract_strided_slice %132 {offsets = [0, 32], sizes = [8, 32], strides = [1, 1]} : vector<8x128xf32> to vector<8x32xf32>
    %135 = vector.extract_strided_slice %128 {offsets = [0, 64], sizes = [8, 32], strides = [1, 1]} : vector<8x128xf32> to vector<8x32xf32>
    %136 = vector.extract_strided_slice %132 {offsets = [0, 96], sizes = [8, 32], strides = [1, 1]} : vector<8x128xf32> to vector<8x32xf32>
    %137 = arith.mulf %134, %116 : vector<8x32xf32>
    %138 = arith.mulf %133, %135 : vector<8x32xf32>
    %139 = arith.addf %137, %138 : vector<8x32xf32>
    %140 = math.tanh %139 : vector<8x32xf32>
    %141 = arith.mulf %136, %140 : vector<8x32xf32>
    %142 = arith.truncf %141 : vector<8x32xf32> to vector<8x32xbf16>
    %c6_i32 = arith.constant 6 : i32
    %143 = arith.index_cast %c6_i32 : i32 to index
    %c0_42 = arith.constant 0 : index
    %c0_43 = arith.constant 0 : index
    %144 = vector.load %arg1[%143, %c0_42, %c0_43] : memref<8x8x32xbf16, #tpu.memory_space<vmem>>, vector<1x8x32xbf16>
    %145 = vector.shape_cast %144 : vector<1x8x32xbf16> to vector<8x32xbf16>
    %cst_44 = arith.constant dense<0.000000e+00> : vector<8x128xf32>
    %146 = tpu.matmul %145, %0, %cst_44 {dimension_numbers = #tpu.dot_dimension_numbers<[1], [0], [0], [1], [0, 0, 1, 1], [], []>} : vector<8x32xbf16>, vector<32x128xbf16>, vector<8x128xf32> -> vector<8x128xf32>
    %cst_45 = arith.constant dense<0.000000e+00> : vector<8x128xf32>
    %147 = tpu.matmul %142, %1, %cst_45 {dimension_numbers = #tpu.dot_dimension_numbers<[1], [0], [0], [1], [0, 0, 1, 1], [], []>} : vector<8x32xbf16>, vector<32x128xbf16>, vector<8x128xf32> -> vector<8x128xf32>
    %148 = arith.addf %146, %147 : vector<8x128xf32>
    %149 = vector.broadcast %2 : vector<1x128xf32> to vector<8x128xf32>
    %150 = arith.addf %148, %149 : vector<8x128xf32>
    %151 = math.tanh %150 : vector<8x128xf32>
    %cst_46 = arith.constant 5.000000e-01 : f32
    %152 = vector.broadcast %cst_46 : f32 to vector<8x128xf32>
    %153 = arith.mulf %152, %151 : vector<8x128xf32>
    %cst_47 = arith.constant 5.000000e-01 : f32
    %154 = vector.broadcast %cst_47 : f32 to vector<8x128xf32>
    %155 = arith.addf %153, %154 : vector<8x128xf32>
    %156 = vector.extract_strided_slice %155 {offsets = [0, 0], sizes = [8, 32], strides = [1, 1]} : vector<8x128xf32> to vector<8x32xf32>
    %157 = vector.extract_strided_slice %155 {offsets = [0, 32], sizes = [8, 32], strides = [1, 1]} : vector<8x128xf32> to vector<8x32xf32>
    %158 = vector.extract_strided_slice %151 {offsets = [0, 64], sizes = [8, 32], strides = [1, 1]} : vector<8x128xf32> to vector<8x32xf32>
    %159 = vector.extract_strided_slice %155 {offsets = [0, 96], sizes = [8, 32], strides = [1, 1]} : vector<8x128xf32> to vector<8x32xf32>
    %160 = arith.mulf %157, %139 : vector<8x32xf32>
    %161 = arith.mulf %156, %158 : vector<8x32xf32>
    %162 = arith.addf %160, %161 : vector<8x32xf32>
    %163 = math.tanh %162 : vector<8x32xf32>
    %164 = arith.mulf %159, %163 : vector<8x32xf32>
    %165 = arith.truncf %164 : vector<8x32xf32> to vector<8x32xbf16>
    %c7_i32 = arith.constant 7 : i32
    %166 = arith.index_cast %c7_i32 : i32 to index
    %c0_48 = arith.constant 0 : index
    %c0_49 = arith.constant 0 : index
    %167 = vector.load %arg1[%166, %c0_48, %c0_49] : memref<8x8x32xbf16, #tpu.memory_space<vmem>>, vector<1x8x32xbf16>
    %168 = vector.shape_cast %167 : vector<1x8x32xbf16> to vector<8x32xbf16>
    %cst_50 = arith.constant dense<0.000000e+00> : vector<8x128xf32>
    %169 = tpu.matmul %168, %0, %cst_50 {dimension_numbers = #tpu.dot_dimension_numbers<[1], [0], [0], [1], [0, 0, 1, 1], [], []>} : vector<8x32xbf16>, vector<32x128xbf16>, vector<8x128xf32> -> vector<8x128xf32>
    %cst_51 = arith.constant dense<0.000000e+00> : vector<8x128xf32>
    %170 = tpu.matmul %165, %1, %cst_51 {dimension_numbers = #tpu.dot_dimension_numbers<[1], [0], [0], [1], [0, 0, 1, 1], [], []>} : vector<8x32xbf16>, vector<32x128xbf16>, vector<8x128xf32> -> vector<8x128xf32>
    %171 = arith.addf %169, %170 : vector<8x128xf32>
    %172 = vector.broadcast %2 : vector<1x128xf32> to vector<8x128xf32>
    %173 = arith.addf %171, %172 : vector<8x128xf32>
    %174 = math.tanh %173 : vector<8x128xf32>
    %cst_52 = arith.constant 5.000000e-01 : f32
    %175 = vector.broadcast %cst_52 : f32 to vector<8x128xf32>
    %176 = arith.mulf %175, %174 : vector<8x128xf32>
    %cst_53 = arith.constant 5.000000e-01 : f32
    %177 = vector.broadcast %cst_53 : f32 to vector<8x128xf32>
    %178 = arith.addf %176, %177 : vector<8x128xf32>
    %179 = vector.extract_strided_slice %178 {offsets = [0, 0], sizes = [8, 32], strides = [1, 1]} : vector<8x128xf32> to vector<8x32xf32>
    %180 = vector.extract_strided_slice %178 {offsets = [0, 32], sizes = [8, 32], strides = [1, 1]} : vector<8x128xf32> to vector<8x32xf32>
    %181 = vector.extract_strided_slice %174 {offsets = [0, 64], sizes = [8, 32], strides = [1, 1]} : vector<8x128xf32> to vector<8x32xf32>
    %182 = vector.extract_strided_slice %178 {offsets = [0, 96], sizes = [8, 32], strides = [1, 1]} : vector<8x128xf32> to vector<8x32xf32>
    %183 = arith.mulf %180, %162 : vector<8x32xf32>
    %184 = arith.mulf %179, %181 : vector<8x32xf32>
    %185 = arith.addf %183, %184 : vector<8x32xf32>
    %186 = math.tanh %185 : vector<8x32xf32>
    %187 = arith.mulf %182, %186 : vector<8x32xf32>
    %188 = arith.truncf %187 : vector<8x32xf32> to vector<8x32xbf16>
    %c8_i32 = arith.constant 8 : i32
    %189 = arith.extf %188 : vector<8x32xbf16> to vector<8x32xf32>
    %c0_54 = arith.constant 0 : index
    %c0_55 = arith.constant 0 : index
    %190 = vector.load %arg5[%c0_54, %c0_55] : memref<8x32xf32, #tpu.memory_space<vmem>>, vector<8x32xf32>
    tpu.vector_store %arg5[%c0_54, %c0_55], %189 {strides = array<i32>} : memref<8x32xf32, #tpu.memory_space<vmem>>, vector<8x32xf32>,
    return
  }
  func.func @transform_0(%arg0: i32) -> (i32, i32, i32) {
    %c0_i32 = arith.constant 0 : i32
    %c0_i32_0 = arith.constant 0 : i32
    %c0_i32_1 = arith.constant 0 : i32
    return %c0_i32, %arg0, %c0_i32_0 : i32, i32, i32
  }
  func.func @transform_1(%arg0: i32) -> (i32, i32) {
    %c0_i32 = arith.constant 0 : i32
    %c0_i32_0 = arith.constant 0 : i32
    %c0_i32_1 = arith.constant 0 : i32
    return %c0_i32, %c0_i32_0 : i32, i32
  }
  func.func @transform_2(%arg0: i32) -> (i32, i32) {
    %c0_i32 = arith.constant 0 : i32
    %c0_i32_0 = arith.constant 0 : i32
    %c0_i32_1 = arith.constant 0 : i32
    return %c0_i32, %c0_i32_0 : i32, i32
  }
  func.func @transform_3(%arg0: i32) -> (i32, i32) {
    %c0_i32 = arith.constant 0 : i32
    %c0_i32_0 = arith.constant 0 : i32
    %c0_i32_1 = arith.constant 0 : i32
    return %c0_i32, %c0_i32_0 : i32, i32
  }
  func.func @transform_4(%arg0: i32) -> (i32, i32) {
    %c0_i32 = arith.constant 0 : i32
    %c0_i32_0 = arith.constant 0 : i32
    return %arg0, %c0_i32 : i32, i32
  }
}

</mosaic_0001>

<bundles_post_ra>
// kernel: tpu_custom_call.1
= control target key start
LH: loop header
LB: loop body
LE: loop exit
PB: predicated region body
PF: predicated region fallthrough
CT: control target
= control target key end

     0   :  { %9 = vsyncpa [#allocation3], 0  ;;  %s925_s0 = inlined_call_operand.hbm [shape: bf16[8,8,32], index: 0, kind: input, shape index: {}]   ;;  %s926_s1 = inlined_call_operand.hbm [shape: bf16[32,128], index: 1, kind: input, shape index: {}]   ;;  %s927_s2 = inlined_call_operand.hbm [shape: bf16[32,128], index: 2, kind: input, shape index: {}]   ;;  %s928_s3 = inlined_call_operand.vmem [shape: f32[1,128], index: 3, kind: input, shape index: {}]   ;;  %s929_s4 = inlined_call_operand.hbm [shape: f32[8,32], index: 4, kind: output, shape index: {}]  }
   0x1   :  { %10 = vsyncpa [#allocation6], 0 }
   0x2   :  { %11 = vsyncpa [#allocation4], 0  ;;  %s29_s17 = sshll.u32 %s926_s1, 4  ;;  %s773_s18 = smov [#allocation5]   ;;  %s30_s17 = int_to_ptr.hbm [resolvable:$true] %s29_s17 }
   0x3   :  { %s31_s19 = sshll.u32 %s773_s18, 4  ;;  %s16_s22 = sshll.u32 %s925_s0, 4  ;;  %s32_s19 = int_to_ptr.vmem [resolvable:$true] %s31_s19  ;;  %s17_s22 = int_to_ptr.hbm [resolvable:$true] %s16_s22 }
   0x4   :  { %s774_s23 = smov 64   ;;  %s775_s24 = smov 4  }
   0x5   :  { %37 = dma.hbm_to_vmem [thread:$0]  %s30_s17, 256, %s32_s19, [#allocation6], %s774_s23, %s774_s23, %s775_s24  }
   0x6   :  { %s776_s25 = smov [#allocation2]   ;;  %s42_s1 = sshll.u32 %s927_s2, 4  ;;  %s43_s1 = int_to_ptr.hbm [resolvable:$true] %s42_s1 }
   0x7   :  { %s18_s26 = sshll.u32 %s776_s25, 4  ;;  %s777_s29 = smov [#allocation7]   ;;  %s19_s26 = int_to_ptr.vmem [resolvable:$true] %s18_s26 }
   0x8   :  { %24 = dma.hbm_to_vmem [thread:$0]  %s17_s22, 512, %s19_s26, [#allocation3], %s774_s23, %s774_s23, %s775_s24  }
   0x9   :  { %s44_s30 = sshll.u32 %s777_s29, 4  ;;  %s45_s30 = int_to_ptr.vmem [resolvable:$true] %s44_s30 }
   0xa   :  { %50 = dma.hbm_to_vmem [thread:$0]  %s43_s1, 256, %s45_s30, [#allocation6], %s774_s23, %s774_s23, %s775_s24  }
   0xb   :  { %767 = dma.done.wait [#allocation3], 512  }
   0xc   :  { %768 = vsyncadd [#allocation3], 4294966784 }
   0xd   :  { %769 = dma.done.wait [#allocation6], 512  }
   0xe   :  { %770 = vsyncadd [#allocation6], 4294966784  ;;  %v821_v0 = vld [vmem:[#allocation7 + $0x8] sm:$0xff]  ;;  %v823_v1 = vld [vmem:[#allocation5 + $0x8] sm:$0xff]  ;;  %vm88_vm0 = vcmask 261120   ;;  %v778_v5 = vmov 0  }
   0xf   :  { %98 = vmatpush.bf16.msra.mxu0 %v821_v0  ;;  %126 = vmatpush.bf16.msra.mxu1 %v823_v1  ;;  %v827_v2 = vld [vmem:[#allocation7] sm:$0xff]  ;;  %v829_v3 = vld [vmem:[#allocation5] sm:$0xff]  ;;  %s779_s5 = smov 32   ;;  %v218_v42 = vld [vmem:[#allocation2 + $0x8] sm:$0xf]  ;;  %s584_s9 = sshll.u32 %s929_s4, 4  ;;  %s585_s9 = int_to_ptr.hbm [resolvable:$true] %s584_s9 }
  0x10   :  { %188 = vmatpush.bf16.msra.mxu3 %v823_v1  ;;  %172 = vmatpush.bf16.msra.mxu2 %v821_v0  ;;  %v75_v4 = vld [vmem:[#allocation2] sm:$0xf]  ;;  %v159_v22 = vld [vmem:[#allocation2 + $0x4] sm:$0xf]  ;;  %v277_v62 = vld [vmem:[#allocation2 + $0xc] sm:$0xf] }
  0x11   :  { %v853_v6 = vld [vmem:[%s928_s3] ss:$0 sm:$0xff]  ;;  %s780_s3 = smov [#allocation8]  }
  0x12   :  { %s582_s6 = sshll.u32 %s780_s3, 4  ;;  %s583_s6 = int_to_ptr.vmem [resolvable:$true] %s582_s6 }
  0x13   :  { %99 = vmatpush.bf16.msra.mxu0 %v827_v2  ;;  %127 = vmatpush.bf16.msra.mxu1 %v829_v3 }
  0x14   :  { %189 = vmatpush.bf16.msra.mxu3 %v829_v3  ;;  %173 = vmatpush.bf16.msra.mxu2 %v827_v2 }
  0x16   :  { %100 = vmatmul.bf16.vlgmr.msra.gmra.mxu0 %v778_v5  ;;  %611 = vmatmul.msk.bf16.vlgmr.msra.gmra.mxu1 %vm88_vm0, %v75_v4 }
  0x17   :  { %231 = vmatpush.bf16.msrb.mxu0 %v821_v0  ;;  %247 = vmatpush.bf16.msrb.mxu1 %v823_v1 }
  0x18   :  { %290 = vmatpush.bf16.msrb.mxu2 %v821_v0  ;;  %306 = vmatpush.bf16.msrb.mxu3 %v823_v1 }
  0x19   :  { %613 = vmatmul.msk.bf16.vlgmr.msra.gmra.mxu3 %vm88_vm0, %v159_v22 }
  0x1b   :  { %248 = vmatpush.bf16.msrb.mxu1 %v829_v3  ;;  %232 = vmatpush.bf16.msrb.mxu0 %v827_v2 }
  0x1c   :  { %307 = vmatpush.bf16.msrb.mxu3 %v829_v3  ;;  %291 = vmatpush.bf16.msrb.mxu2 %v827_v2 }
  0x1f   :  { %349 = vmatpush.bf16.msra.mxu0 %v821_v0  ;;  %365 = vmatpush.bf16.msra.mxu1 %v823_v1 }
  0x20   :  { %424 = vmatpush.bf16.msra.mxu3 %v823_v1 }
  0x23   :  { %366 = vmatpush.bf16.msra.mxu1 %v829_v3  ;;  %350 = vmatpush.bf16.msra.mxu0 %v827_v2 }
  0x24   :  { %425 = vmatpush.bf16.msra.mxu3 %v829_v3 }
  0x26   :  { %615 = vmatmul.msk.bf16.vlgmr.msrb.gmra.mxu1 %vm88_vm0, %v218_v42 }
  0x27   :  { %483 = vmatpush.bf16.msrb.mxu1 %v823_v1 }
  0x29   :  { %617 = vmatmul.msk.bf16.vlgmr.msrb.gmra.mxu3 %vm88_vm0, %v277_v62 }
  0x2a   :  { %542 = vmatpush.bf16.msrb.mxu3 %v823_v1 }
  0x2b   :  { %484 = vmatpush.bf16.msrb.mxu1 %v829_v3 }
  0x2e   :  { %543 = vmatpush.bf16.msrb.mxu3 %v829_v3 }
  0x93   :  { %v101_v7 = vpop.f32.mrf.mxu0  ;;  %v129_v8 = vpop.f32.mrf.mxu1 }
  0x94   :  { %v130_v9 = vadd.f32 %v129_v8, %v101_v7 }
  0x96   :  { %v136_v10 = vadd.f32 %v853_v6, %v130_v9 }
  0x98   :  { %639 = vtanh.f32 %v136_v10 }
  0x9b   :  { %v103_v11 = vpop.f32.mrf.mxu0  ;;  %v131_v12 = vpop.f32.mrf.mxu1 }
  0x9c   :  { %v191_v26 = vpop.f32.mrf.mxu3 }
  0x9e   :  { %v640_v13 = vpop.eup %639 }
  0x9f   :  { %142 = vrot.lane.b32.xlu0 %v640_v13, %s774_s23  ;;  %v138_v14 = vmul.f32 0.5, %v640_v13 }
  0xa1   :  { %v139_v15 = vadd.f32 0.5, %v138_v14 }
  0xa3   :  { %v140_v18 = vmul.f32 0.0, %v139_v15  ;;  %v250_v46 = vpop.f32.mrf.mxu1 }
  0xa4   :  { %v193_v27 = vpop.f32.mrf.mxu3 }
  0xab   :  { %v252_v47 = vpop.f32.mrf.mxu1 }
  0xac   :  { %v309_v8 = vpop.f32.mrf.mxu3 }
  0xb4   :  { %v311_v9 = vpop.f32.mrf.mxu3 }
 0x111   :  { %v143_v16 = vpop.permute.xlu0 %142 }
 0x112   :  { %v145_v17 = vmul.f32 %v143_v16, %v139_v15 }
 0x114   :  { %147 = vrot.lane.b32.xlu0 %v145_v17, %s779_s5 }
 0x186   :  { %v148_v19 = vpop.permute.xlu0 %147 }
 0x187   :  { %v150_v20 = vadd.f32 %v148_v19, %v140_v18  ;;  %v336_v19 = vld [vmem:[#allocation2 + $0x10] sm:$0xf] }
 0x188   :  { %619 = vmatmul.msk.bf16.vlgmr.msra.gmra.mxu1 %vm88_vm0, %v336_v19 }
 0x189   :  { %641 = vtanh.f32 %v150_v20 }
 0x18f   :  { %v642_v21 = vpop.eup %641 }
 0x190   :  { %153 = vrot.lane.b32.xlu1 %v642_v21, %s774_s23 }
 0x202   :  { %v154_v23 = vpop.permute.xlu1 %153 }
 0x203   :  { %v156_v24 = vmul.f32 %v154_v23, %v139_v15 }
 0x205   :  { %v157_v25 = vpack.c.bf16 %v156_v24, %v156_v24  ;;  %v368_v23 = vpop.f32.mrf.mxu1 }
 0x207   :  { %161 = vrot.lane.b32.xlu1 %v157_v25, %s779_s5 }
 0x20d   :  { %v370_v24 = vpop.f32.mrf.mxu1 }
 0x279   :  { %v162_v28 = vpop.permute.xlu1 %161 }
 0x27a   :  { %612 = vmatmul.msk.bf16.vlgmr.msra.gmra.mxu2 %vm88_vm0, %v162_v28 }
 0x27b   :  { %408 = vmatpush.bf16.msra.mxu2 %v821_v0 }
 0x27f   :  { %409 = vmatpush.bf16.msra.mxu2 %v827_v2 }
 0x2fd   :  { %v175_v29 = vpop.f32.mrf.mxu2 }
 0x2fe   :  { %v192_v30 = vadd.f32 %v191_v26, %v175_v29 }
 0x300   :  { %v195_v31 = vadd.f32 %v853_v6, %v192_v30 }
 0x302   :  { %643 = vtanh.f32 %v195_v31 }
 0x305   :  { %v177_v32 = vpop.f32.mrf.mxu2 }
 0x308   :  { %v644_v33 = vpop.eup %643 }
 0x309   :  { %201 = vrot.lane.b32.xlu2 %v644_v33, %s774_s23  ;;  %v197_v34 = vmul.f32 0.5, %v644_v33 }
 0x30b   :  { %v198_v35 = vadd.f32 0.5, %v197_v34 }
 0x30d   :  { %v199_v38 = vmul.f32 %v198_v35, %v150_v20 }
 0x363   :  { %v202_v36 = vpop.permute.xlu2 %201 }
 0x364   :  { %v204_v37 = vmul.f32 %v202_v36, %v198_v35 }
 0x366   :  { %206 = vrot.lane.b32.xlu2 %v204_v37, %s779_s5 }
 0x3c0   :  { %v207_v39 = vpop.permute.xlu2 %206 }
 0x3c1   :  { %v209_v40 = vadd.f32 %v207_v39, %v199_v38  ;;  %v395_v39 = vld [vmem:[#allocation2 + $0x14] sm:$0xf] }
 0x3c2   :  { %621 = vmatmul.msk.bf16.vlgmr.msra.gmra.mxu3 %vm88_vm0, %v395_v39 }
 0x3c3   :  { %645 = vtanh.f32 %v209_v40 }
 0x3c9   :  { %v646_v41 = vpop.eup %645 }
 0x3ca   :  { %212 = vrot.lane.b32.xlu0 %v646_v41, %s774_s23 }
 0x43c   :  { %v213_v43 = vpop.permute.xlu0 %212 }
 0x43d   :  { %v215_v44 = vmul.f32 %v213_v43, %v198_v35 }
 0x43f   :  { %v216_v45 = vpack.c.bf16 %v215_v44, %v215_v44 }
 0x441   :  { %220 = vrot.lane.b32.xlu1 %v216_v45, %s779_s5 }
 0x445   :  { %v427_v43 = vpop.f32.mrf.mxu3 }
 0x44d   :  { %v429_v44 = vpop.f32.mrf.mxu3 }
 0x4b3   :  { %v221_v48 = vpop.permute.xlu1 %220 }
 0x4b4   :  { %614 = vmatmul.msk.bf16.vlgmr.msrb.gmra.mxu0 %vm88_vm0, %v221_v48 }
 0x4b5   :  { %467 = vmatpush.bf16.msrb.mxu0 %v821_v0 }
 0x4b9   :  { %468 = vmatpush.bf16.msrb.mxu0 %v827_v2 }
 0x531   :  { %v234_v49 = vpop.f32.mrf.mxu0 }
 0x532   :  { %v251_v50 = vadd.f32 %v250_v46, %v234_v49 }
 0x534   :  { %v254_v51 = vadd.f32 %v853_v6, %v251_v50 }
 0x536   :  { %647 = vtanh.f32 %v254_v51 }
 0x539   :  { %v236_v52 = vpop.f32.mrf.mxu0 }
 0x53c   :  { %v648_v53 = vpop.eup %647 }
 0x53d   :  { %260 = vrot.lane.b32.xlu2 %v648_v53, %s774_s23  ;;  %v256_v54 = vmul.f32 0.5, %v648_v53 }
 0x53f   :  { %v257_v55 = vadd.f32 0.5, %v256_v54 }
 0x541   :  { %v258_v58 = vmul.f32 %v257_v55, %v209_v40 }
 0x597   :  { %v261_v56 = vpop.permute.xlu2 %260 }
 0x598   :  { %v263_v57 = vmul.f32 %v261_v56, %v257_v55 }
 0x59a   :  { %265 = vrot.lane.b32.xlu0 %v263_v57, %s779_s5 }
 0x60c   :  { %v266_v59 = vpop.permute.xlu0 %265 }
 0x60d   :  { %v268_v60 = vadd.f32 %v266_v59, %v258_v58  ;;  %v454_v59 = vld [vmem:[#allocation2 + $0x18] sm:$0xf] }
 0x60e   :  { %623 = vmatmul.msk.bf16.vlgmr.msrb.gmra.mxu1 %vm88_vm0, %v454_v59 }
 0x60f   :  { %649 = vtanh.f32 %v268_v60 }
 0x615   :  { %v650_v61 = vpop.eup %649 }
 0x616   :  { %271 = vrot.lane.b32.xlu1 %v650_v61, %s774_s23 }
 0x688   :  { %v272_v63 = vpop.permute.xlu1 %271 }
 0x689   :  { %v274_v4 = vmul.f32 %v272_v63, %v257_v55 }
 0x68b   :  { %v275_v5 = vpack.c.bf16 %v274_v4, %v274_v4  ;;  %v486_v4 = vpop.f32.mrf.mxu1 }
 0x68d   :  { %279 = vrot.lane.b32.xlu2 %v275_v5, %s779_s5 }
 0x693   :  { %v488_v5 = vpop.f32.mrf.mxu1 }
 0x6e7   :  { %v280_v7 = vpop.permute.xlu2 %279 }
 0x6e8   :  { %616 = vmatmul.msk.bf16.vlgmr.msrb.gmra.mxu2 %vm88_vm0, %v280_v7 }
 0x6e9   :  { %526 = vmatpush.bf16.msrb.mxu2 %v821_v0 }
 0x6ed   :  { %527 = vmatpush.bf16.msrb.mxu2 %v827_v2 }
 0x76b   :  { %v293_v10 = vpop.f32.mrf.mxu2 }
 0x76c   :  { %v310_v11 = vadd.f32 %v309_v8, %v293_v10 }
 0x76e   :  { %v313_v1 = vadd.f32 %v853_v6, %v310_v11 }
 0x770   :  { %651 = vtanh.f32 %v313_v1 }
 0x773   :  { %v295_v3 = vpop.f32.mrf.mxu2 }
 0x776   :  { %v652_v12 = vpop.eup %651 }
 0x777   :  { %319 = vrot.lane.b32.xlu0 %v652_v12, %s774_s23  ;;  %v315_v13 = vmul.f32 0.5, %v652_v12 }
 0x779   :  { %v316_v14 = vadd.f32 0.5, %v315_v13 }
 0x77b   :  { %v317_v0 = vmul.f32 %v316_v14, %v268_v60 }
 0x7e9   :  { %v320_v15 = vpop.permute.xlu0 %319 }
 0x7ea   :  { %v322_v16 = vmul.f32 %v320_v15, %v316_v14 }
 0x7ec   :  { %324 = vrot.lane.b32.xlu1 %v322_v16, %s779_s5 }
 0x85e   :  { %v325_v17 = vpop.permute.xlu1 %324 }
 0x85f   :  { %v327_v2 = vadd.f32 %v325_v17, %v317_v0  ;;  %v513_v17 = vld [vmem:[#allocation2 + $0x1c] sm:$0xf] }
 0x860   :  { %625 = vmatmul.msk.bf16.vlgmr.msrb.gmra.mxu3 %vm88_vm0, %v513_v17 }
 0x861   :  { %653 = vtanh.f32 %v327_v2 }
 0x867   :  { %v654_v18 = vpop.eup %653 }
 0x868   :  { %330 = vrot.lane.b32.xlu2 %v654_v18, %s774_s23 }
 0x8c2   :  { %v331_v20 = vpop.permute.xlu2 %330 }
 0x8c3   :  { %v333_v21 = vmul.f32 %v331_v20, %v316_v14 }
 0x8c5   :  { %v334_v22 = vpack.c.bf16 %v333_v21, %v333_v21 }
 0x8c7   :  { %338 = vrot.lane.b32.xlu0 %v334_v22, %s779_s5 }
 0x8e3   :  { %v545_v20 = vpop.f32.mrf.mxu3 }
 0x8eb   :  { %v547_v21 = vpop.f32.mrf.mxu3 }
 0x939   :  { %v339_v25 = vpop.permute.xlu0 %338 }
 0x93a   :  { %618 = vmatmul.msk.bf16.vlgmr.msra.gmra.mxu0 %vm88_vm0, %v339_v25 }
 0x9b7   :  { %v352_v26 = vpop.f32.mrf.mxu0 }
 0x9b8   :  { %v369_v27 = vadd.f32 %v368_v23, %v352_v26 }
 0x9ba   :  { %v372_v28 = vadd.f32 %v853_v6, %v369_v27 }
 0x9bc   :  { %655 = vtanh.f32 %v372_v28 }
 0x9bf   :  { %v354_v29 = vpop.f32.mrf.mxu0 }
 0x9c2   :  { %v656_v30 = vpop.eup %655 }
 0x9c3   :  { %378 = vrot.lane.b32.xlu1 %v656_v30, %s774_s23  ;;  %v374_v31 = vmul.f32 0.5, %v656_v30 }
 0x9c5   :  { %v375_v32 = vadd.f32 0.5, %v374_v31 }
 0x9c7   :  { %v376_v35 = vmul.f32 %v375_v32, %v327_v2 }
 0xa35   :  { %v379_v33 = vpop.permute.xlu1 %378 }
 0xa36   :  { %v381_v34 = vmul.f32 %v379_v33, %v375_v32 }
 0xa38   :  { %383 = vrot.lane.b32.xlu2 %v381_v34, %s779_s5 }
 0xa92   :  { %v384_v36 = vpop.permute.xlu2 %383 }
 0xa93   :  { %v386_v37 = vadd.f32 %v384_v36, %v376_v35 }
 0xa95   :  { %657 = vtanh.f32 %v386_v37 }
 0xa9b   :  { %v658_v38 = vpop.eup %657 }
 0xa9c   :  { %389 = vrot.lane.b32.xlu0 %v658_v38, %s774_s23 }
 0xb0e   :  { %v390_v40 = vpop.permute.xlu0 %389 }
 0xb0f   :  { %v392_v41 = vmul.f32 %v390_v40, %v375_v32 }
 0xb11   :  { %v393_v42 = vpack.c.bf16 %v392_v41, %v392_v41 }
 0xb13   :  { %397 = vrot.lane.b32.xlu1 %v393_v42, %s779_s5 }
 0xb85   :  { %v398_v45 = vpop.permute.xlu1 %397 }
 0xb86   :  { %620 = vmatmul.msk.bf16.vlgmr.msra.gmra.mxu2 %vm88_vm0, %v398_v45 }
 0xc09   :  { %v411_v46 = vpop.f32.mrf.mxu2 }
 0xc0a   :  { %v428_v47 = vadd.f32 %v427_v43, %v411_v46 }
 0xc0c   :  { %v431_v48 = vadd.f32 %v853_v6, %v428_v47 }
 0xc0e   :  { %659 = vtanh.f32 %v431_v48 }
 0xc11   :  { %v413_v49 = vpop.f32.mrf.mxu2 }
 0xc14   :  { %v660_v50 = vpop.eup %659 }
 0xc15   :  { %437 = vrot.lane.b32.xlu2 %v660_v50, %s774_s23  ;;  %v433_v51 = vmul.f32 0.5, %v660_v50 }
 0xc17   :  { %v434_v52 = vadd.f32 0.5, %v433_v51 }
 0xc19   :  { %v435_v55 = vmul.f32 %v434_v52, %v386_v37 }
 0xc6f   :  { %v438_v53 = vpop.permute.xlu2 %437 }
 0xc70   :  { %v440_v54 = vmul.f32 %v438_v53, %v434_v52 }
 0xc72   :  { %442 = vrot.lane.b32.xlu0 %v440_v54, %s779_s5 }
 0xce4   :  { %v443_v56 = vpop.permute.xlu0 %442 }
 0xce5   :  { %v445_v57 = vadd.f32 %v443_v56, %v435_v55 }
 0xce7   :  { %661 = vtanh.f32 %v445_v57 }
 0xced   :  { %v662_v58 = vpop.eup %661 }
 0xcee   :  { %448 = vrot.lane.b32.xlu1 %v662_v58, %s774_s23 }
 0xd60   :  { %v449_v60 = vpop.permute.xlu1 %448 }
 0xd61   :  { %v451_v61 = vmul.f32 %v449_v60, %v434_v52 }
 0xd63   :  { %v452_v62 = vpack.c.bf16 %v451_v61, %v451_v61 }
 0xd65   :  { %456 = vrot.lane.b32.xlu2 %v452_v62, %s779_s5 }
 0xdbf   :  { %v457_v63 = vpop.permute.xlu2 %456 }
 0xdc0   :  { %622 = vmatmul.msk.bf16.vlgmr.msrb.gmra.mxu0 %vm88_vm0, %v457_v63 }
 0xe3d   :  { %v470_v7 = vpop.f32.mrf.mxu0 }
 0xe3e   :  { %v487_v8 = vadd.f32 %v486_v4, %v470_v7 }
 0xe40   :  { %v490_v9 = vadd.f32 %v853_v6, %v487_v8 }
 0xe42   :  { %663 = vtanh.f32 %v490_v9 }
 0xe45   :  { %v472_v10 = vpop.f32.mrf.mxu0 }
 0xe48   :  { %v664_v11 = vpop.eup %663 }
 0xe49   :  { %496 = vrot.lane.b32.xlu0 %v664_v11, %s774_s23  ;;  %v492_v1 = vmul.f32 0.5, %v664_v11 }
 0xe4b   :  { %v493_v3 = vadd.f32 0.5, %v492_v1 }
 0xe4d   :  { %v494_v14 = vmul.f32 %v493_v3, %v445_v57 }
 0xebb   :  { %v497_v12 = vpop.permute.xlu0 %496 }
 0xebc   :  { %v499_v13 = vmul.f32 %v497_v12, %v493_v3 }
 0xebe   :  { %501 = vrot.lane.b32.xlu1 %v499_v13, %s779_s5 }
 0xf30   :  { %v502_v15 = vpop.permute.xlu1 %501 }
 0xf31   :  { %v504_v16 = vadd.f32 %v502_v15, %v494_v14 }
 0xf33   :  { %665 = vtanh.f32 %v504_v16 }
 0xf39   :  { %v666_v0 = vpop.eup %665 }
 0xf3a   :  { %507 = vrot.lane.b32.xlu2 %v666_v0, %s774_s23 }
 0xf94   :  { %v508_v2 = vpop.permute.xlu2 %507 }
 0xf95   :  { %v510_v18 = vmul.f32 %v508_v2, %v493_v3 }
 0xf97   :  { %v511_v19 = vpack.c.bf16 %v510_v18, %v510_v18 }
 0xf99   :  { %515 = vrot.lane.b32.xlu0 %v511_v19, %s779_s5 }
0x100b   :  { %v516_v22 = vpop.permute.xlu0 %515 }
0x100c   :  { %624 = vmatmul.msk.bf16.vlgmr.msrb.gmra.mxu2 %vm88_vm0, %v516_v22 }
0x108f   :  { %v529_v23 = vpop.f32.mrf.mxu2 }
0x1090   :  { %v546_v24 = vadd.f32 %v545_v20, %v529_v23 }
0x1092   :  { %v549_v25 = vadd.f32 %v853_v6, %v546_v24 }
0x1094   :  { %667 = vtanh.f32 %v549_v25 }
0x1097   :  { %v531_v26 = vpop.f32.mrf.mxu2 }
0x109a   :  { %v668_v27 = vpop.eup %667 }
0x109b   :  { %555 = vrot.lane.b32.xlu1 %v668_v27, %s774_s23  ;;  %v551_v28 = vmul.f32 0.5, %v668_v27 }
0x109d   :  { %v552_v29 = vadd.f32 0.5, %v551_v28 }
0x109f   :  { %v553_v32 = vmul.f32 %v552_v29, %v504_v16 }
0x110d   :  { %v556_v30 = vpop.permute.xlu1 %555 }
0x110e   :  { %v558_v31 = vmul.f32 %v556_v30, %v552_v29 }
0x1110   :  { %560 = vrot.lane.b32.xlu2 %v558_v31, %s779_s5 }
0x116a   :  { %v561_v33 = vpop.permute.xlu2 %560 }
0x116b   :  { %v563_v34 = vadd.f32 %v561_v33, %v553_v32 }
0x116d   :  { %669 = vtanh.f32 %v563_v34 }
0x1173   :  { %v670_v35 = vpop.eup %669 }
0x1174   :  { %566 = vrot.lane.b32.xlu0 %v670_v35, %s774_s23 }
0x11e6   :  { %v567_v36 = vpop.permute.xlu0 %566 }
0x11e7   :  { %v569_v6 = vmul.f32 %v567_v36, %v552_v29 }
0x11e9   :  { %v570_v37 = vpack.c.bf16 %v569_v6, %v569_v6 }
0x11eb   :  { %v571_v38 = vunpack.c.l.bf16 %v570_v37 }
0x11ed   :  { %573 = vrot.lane.b32.xlu1 %v571_v38, %s779_s5 }
0x125f   :  { %v574_v39 = vpop.permute.xlu1 %573 }
0x1260   :  { %576 = vst.msk [vmem:[#allocation8] sm:$0xff] %vm88_vm0, %v574_v39 }
0x1261   :  { %587 = dma.vmem_to_hbm [thread:$0]  %s583_s6, 128, %s585_s9, [#allocation4]  }
0x1262   :  { %771 = dma.done.wait [#allocation4], 128  }
0x1263   :  { %772 = vsyncadd [#allocation4], 4294967168 }
0x1264   :  { %592 = vsyncpa [#allocation3], 1 }
0x1265   :  { %593 = vsyncpa [#allocation6], 1 }
0x1266   :  { %594 = vsyncpa [#allocation4], 1 }

</bundles_post_ra>
